<compile_context>
chip_gen: v7x
topology: tpu7x:2x2x1
jax: 0.10.0
libtpu: 0.0.40
codegen_flags: <defaults>
</compile_context>

<pallas_src>
import jax
import jax.numpy as jnp
from jax.experimental import pallas as pl
from jax.experimental.pallas import tpu as pltpu

IN_FEATURES = 3 * 32 * 32   # 3072
H1, H2, OUT = 128, 64, 10
OUT_PAD = 128               # lane-dense padded logits width
TM_MAX = 256                # batch-tile rows: fills MXU M dim, >=2 grid steps for B>256


def _round_up(n, m):
    return ((n + m - 1) // m) * m


def mlp_kernel(x_ref, w1_ref, b1_ref, w2_ref, b2_ref, w3_ref, b3_ref, o_ref):
    # fc1: cast the f32 activation tile to bf16 in-kernel (hides under the DMA),
    # bf16 x bf16 -> f32 accumulate on the MXU; bias + ReLU in f32.
    # (For exact f32 PyTorch parity, drop both casts — the kernel is HBM-bound so the
    # multi-pass f32 MXU emulation costs essentially no wall time.)
    x_bf = x_ref[...].astype(jnp.bfloat16)
    h1 = jnp.dot(x_bf, w1_ref[...], preferred_element_type=jnp.float32)
    h1 = jnp.maximum(h1 + b1_ref[...], 0.0)
    # fc2 + ReLU (f32; tiny 128x64 matmul).
    h2 = jnp.dot(h1, w2_ref[...], preferred_element_type=jnp.float32)
    h2 = jnp.maximum(h2 + b2_ref[...], 0.0)
    # fc3 -> padded 128-wide logits (lane-dense, unmasked store except partial last tile).
    h3 = jnp.dot(h2, w3_ref[...], preferred_element_type=jnp.float32)
    o_ref[...] = (h3 + b3_ref[...]).astype(o_ref.dtype)


@jax.jit
def mlp_forward(x_nchw, packed_params):
    """Forward pass. `packed_params` must come from pack_params() (done once)."""
    w1_bf, b1, w2, b2, w3_p, b3_p = packed_params
    B = x_nchw.shape[0]
    x_flat = x_nchw.reshape(B, -1)                      # == torch.flatten(x, 1); stays f32

    # --- batch tiling (static under jit); no padding of x, last tile may be partial ---
    TM = min(TM_MAX, _round_up(B, 8))                   # sublane-aligned batch tile
    grid = (pl.cdiv(B, TM),)

    out_padded = pl.pallas_call(
        mlp_kernel,
        out_shape=jax.ShapeDtypeStruct((B, OUT_PAD), jnp.float32),
        grid=grid,
        in_specs=[
            pl.BlockSpec((TM, IN_FEATURES), lambda i: (i, 0)),   # x tile (streamed, f32)
            pl.BlockSpec((IN_FEATURES, H1), lambda i: (0, 0)),   # w1 (resident, bf16)
            pl.BlockSpec((1, H1), lambda i: (0, 0)),             # b1 (resident, f32)
            pl.BlockSpec((H1, H2), lambda i: (0, 0)),            # w2 (resident, f32)
            pl.BlockSpec((1, H2), lambda i: (0, 0)),             # b2
            pl.BlockSpec((H2, OUT_PAD), lambda i: (0, 0)),       # w3 (pre-padded, resident)
            pl.BlockSpec((1, OUT_PAD), lambda i: (0, 0)),        # b3 (pre-padded)
        ],
        out_specs=pl.BlockSpec((TM, OUT_PAD), lambda i: (i, 0)),
        compiler_params=pltpu.CompilerParams(
            dimension_semantics=("parallel",),   # v7x: shard batch tiles across 2 TCs
        ),
    )(x_flat, w1_bf, b1, w2, b2, w3_p, b3_p)

    return out_padded[:, :OUT]


def init_params(key):
    """Deterministic init mirroring nn.Linear's U(-1/sqrt(fan_in), 1/sqrt(fan_in))."""
    def linear(key, fan_in, fan_out):
        kw, kb = jax.random.split(key)
        bound = 1.0 / jnp.sqrt(fan_in)
        # stored as (in, out) so the kernel computes x @ W
        w = jax.random.uniform(kw, (fan_in, fan_out), jnp.float32, -bound, bound)
        b = jax.random.uniform(kb, (1, fan_out), jnp.float32, -bound, bound)
        return w, b

    k1, k2, k3 = jax.random.split(key, 3)
    w1, b1 = linear(k1, IN_FEATURES, H1)
    w2, b2 = linear(k2, H1, H2)
    w3, b3 = linear(k3, H2, OUT)
    return (w1, b1, w2, b2, w3, b3)


def pack_params(params):
    """One-time packing of f32 (in,out)-layout params into kernel-ready layout.

    Run once at model load / init — keeps cast & pad ops off the per-call path.
    """
    w1, b1, w2, b2, w3, b3 = params
    w1_bf = w1.astype(jnp.bfloat16)                       # resident bf16 fc1 weight
    w3_p = jnp.pad(w3, ((0, 0), (0, OUT_PAD - OUT)))      # (64, 128) lane-dense
    b3_p = jnp.pad(b3, ((0, 0), (0, OUT_PAD - OUT)))      # (1, 128)
    return (w1_bf, b1, w2, b2, w3_p, b3_p)


def mlp_reference_f32(x_nchw, params):
    """Pure-f32 reference (exact PyTorch semantics)."""
    w1, b1, w2, b2, w3, b3 = params
    x = x_nchw.reshape(x_nchw.shape[0], -1)
    h = jnp.maximum(x @ w1 + b1, 0.0)
    h = jnp.maximum(h @ w2 + b2, 0.0)
    return h @ w3 + b3


def mlp_reference_matched(x_nchw, params):
    """Reference with the same bf16 fc1 operands the kernel uses (tight check)."""
    w1, b1, w2, b2, w3, b3 = params
    x = x_nchw.reshape(x_nchw.shape[0], -1)
    h = jnp.dot(x.astype(jnp.bfloat16), w1.astype(jnp.bfloat16),
                preferred_element_type=jnp.float32)
    h = jnp.maximum(h + b1, 0.0)
    h = jnp.maximum(h @ w2 + b2, 0.0)
    return h @ w3 + b3


if __name__ == "__main__":
    key = jax.random.PRNGKey(0)
    kx, kp = jax.random.split(key)

    B = 2
    x = jax.random.normal(kx, (B, 3, 32, 32), dtype=jnp.float32)  # CIFAR-10-like NCHW
    params = init_params(kp)
    packed = jax.block_until_ready(pack_params(params))           # one-time packing

    out = mlp_forward(x, packed)
    out = jax.block_until_ready(out)
    assert out.shape == (B, OUT), out.shape

    # Tight check against a reference using the same bf16 fc1 operands.
    ref_matched = mlp_reference_matched(x, params)
    assert jnp.allclose(out, ref_matched, atol=1e-3, rtol=1e-3), "mismatch vs matched ref"

    # Loose check against pure-f32 PyTorch-equivalent semantics (bf16 fc1 rounding only).
    ref_f32 = mlp_reference_f32(x, params)
    assert jnp.allclose(out, ref_f32, atol=5e-2, rtol=5e-2), "mismatch vs f32 reference"

    print("KERNEL_OK")
</pallas_src>

<mosaic_0001>
module attributes {stable_mosaic.version = 11 : i64} {
  func.func @mlp_kernel(%arg0: i32, %arg1: memref<8x3072xf32, #tpu.memory_space<vmem>>, %arg2: memref<3072x128xbf16, #tpu.memory_space<vmem>>, %arg3: memref<1x128xf32, #tpu.memory_space<vmem>>, %arg4: memref<128x64xf32, #tpu.memory_space<vmem>>, %arg5: memref<1x64xf32, #tpu.memory_space<vmem>>, %arg6: memref<64x128xf32, #tpu.memory_space<vmem>>, %arg7: memref<1x128xf32, #tpu.memory_space<vmem>>, %arg8: memref<8x128xf32, #tpu.memory_space<vmem>>) attributes {dimension_semantics = [#tpu.dimension_semantics<parallel>], iteration_bounds = array<i64: 1>, scalar_prefetch = 0 : i64, scratch_operands = 0 : i64, tpu.core_type = #tpu.core_type<tc>, window_params = [{transform_indices = @transform_0, window_bounds = array<i64: 8, 3072>}, {pipeline_mode = #tpu.pipeline_mode<synchronous>, transform_indices = @transform_1, window_bounds = array<i64: 3072, 128>}, {pipeline_mode = #tpu.pipeline_mode<synchronous>, transform_indices = @transform_2, window_bounds = array<i64: 1, 128>}, {pipeline_mode = #tpu.pipeline_mode<synchronous>, transform_indices = @transform_3, window_bounds = array<i64: 128, 64>}, {pipeline_mode = #tpu.pipeline_mode<synchronous>, transform_indices = @transform_4, window_bounds = array<i64: 1, 64>}, {pipeline_mode = #tpu.pipeline_mode<synchronous>, transform_indices = @transform_5, window_bounds = array<i64: 64, 128>}, {pipeline_mode = #tpu.pipeline_mode<synchronous>, transform_indices = @transform_6, window_bounds = array<i64: 1, 128>}, {transform_indices = @transform_7, window_bounds = array<i64: 8, 128>}]} {
    %c0 = arith.constant 0 : index
    %c0_0 = arith.constant 0 : index
    %0 = vector.load %arg1[%c0, %c0_0] : memref<8x3072xf32, #tpu.memory_space<vmem>>, vector<8x3072xf32>
    %1 = arith.truncf %0 : vector<8x3072xf32> to vector<8x3072xbf16>
    %c0_1 = arith.constant 0 : index
    %c0_2 = arith.constant 0 : index
    %2 = vector.load %arg2[%c0_1, %c0_2] : memref<3072x128xbf16, #tpu.memory_space<vmem>>, vector<3072x128xbf16>
    %cst = arith.constant dense<0.000000e+00> : vector<8x128xf32>
    %3 = tpu.matmul %1, %2, %cst {dimension_numbers = #tpu.dot_dimension_numbers<[1], [0], [0], [1], [0, 0, 1, 1], [], []>} : vector<8x3072xbf16>, vector<3072x128xbf16>, vector<8x128xf32> -> vector<8x128xf32>
    %c0_3 = arith.constant 0 : index
    %c0_4 = arith.constant 0 : index
    %4 = vector.load %arg3[%c0_3, %c0_4] : memref<1x128xf32, #tpu.memory_space<vmem>>, vector<1x128xf32>
    %5 = vector.broadcast %4 : vector<1x128xf32> to vector<8x128xf32>
    %6 = arith.addf %3, %5 : vector<8x128xf32>
    %cst_5 = arith.constant 0.000000e+00 : f32
    %7 = vector.broadcast %cst_5 : f32 to vector<8x128xf32>
    %8 = arith.maximumf %6, %7 : vector<8x128xf32>
    %c0_6 = arith.constant 0 : index
    %c0_7 = arith.constant 0 : index
    %9 = vector.load %arg4[%c0_6, %c0_7] : memref<128x64xf32, #tpu.memory_space<vmem>>, vector<128x64xf32>
    %cst_8 = arith.constant dense<0.000000e+00> : vector<8x64xf32>
    %10 = tpu.matmul %8, %9, %cst_8 {dimension_numbers = #tpu.dot_dimension_numbers<[1], [0], [0], [1], [0, 0, 1, 1], [], []>} : vector<8x128xf32>, vector<128x64xf32>, vector<8x64xf32> -> vector<8x64xf32>
    %c0_9 = arith.constant 0 : index
    %c0_10 = arith.constant 0 : index
    %11 = vector.load %arg5[%c0_9, %c0_10] : memref<1x64xf32, #tpu.memory_space<vmem>>, vector<1x64xf32>
    %12 = vector.broadcast %11 : vector<1x64xf32> to vector<8x64xf32>
    %13 = arith.addf %10, %12 : vector<8x64xf32>
    %cst_11 = arith.constant 0.000000e+00 : f32
    %14 = vector.broadcast %cst_11 : f32 to vector<8x64xf32>
    %15 = arith.maximumf %13, %14 : vector<8x64xf32>
    %c0_12 = arith.constant 0 : index
    %c0_13 = arith.constant 0 : index
    %16 = vector.load %arg6[%c0_12, %c0_13] : memref<64x128xf32, #tpu.memory_space<vmem>>, vector<64x128xf32>
    %cst_14 = arith.constant dense<0.000000e+00> : vector<8x128xf32>
    %17 = tpu.matmul %15, %16, %cst_14 {dimension_numbers = #tpu.dot_dimension_numbers<[1], [0], [0], [1], [0, 0, 1, 1], [], []>} : vector<8x64xf32>, vector<64x128xf32>, vector<8x128xf32> -> vector<8x128xf32>
    %c0_15 = arith.constant 0 : index
    %c0_16 = arith.constant 0 : index
    %18 = vector.load %arg7[%c0_15, %c0_16] : memref<1x128xf32, #tpu.memory_space<vmem>>, vector<1x128xf32>
    %19 = vector.broadcast %18 : vector<1x128xf32> to vector<8x128xf32>
    %20 = arith.addf %17, %19 : vector<8x128xf32>
    %c0_17 = arith.constant 0 : index
    %c0_18 = arith.constant 0 : index
    %21 = vector.load %arg8[%c0_17, %c0_18] : memref<8x128xf32, #tpu.memory_space<vmem>>, vector<8x128xf32>
    tpu.vector_store %arg8[%c0_17, %c0_18], %20 {strides = array<i32>} : memref<8x128xf32, #tpu.memory_space<vmem>>, vector<8x128xf32>,
    return
  }
  func.func @transform_0(%arg0: i32) -> (i32, i32) {
    %c0_i32 = arith.constant 0 : i32
    %c0_i32_0 = arith.constant 0 : i32
    return %arg0, %c0_i32 : i32, i32
  }
  func.func @transform_1(%arg0: i32) -> (i32, i32) {
    %c0_i32 = arith.constant 0 : i32
    %c0_i32_0 = arith.constant 0 : i32
    %c0_i32_1 = arith.constant 0 : i32
    return %c0_i32, %c0_i32_0 : i32, i32
  }
  func.func @transform_2(%arg0: i32) -> (i32, i32) {
    %c0_i32 = arith.constant 0 : i32
    %c0_i32_0 = arith.constant 0 : i32
    %c0_i32_1 = arith.constant 0 : i32
    return %c0_i32, %c0_i32_0 : i32, i32
  }
  func.func @transform_3(%arg0: i32) -> (i32, i32) {
    %c0_i32 = arith.constant 0 : i32
    %c0_i32_0 = arith.constant 0 : i32
    %c0_i32_1 = arith.constant 0 : i32
    return %c0_i32, %c0_i32_0 : i32, i32
  }
  func.func @transform_4(%arg0: i32) -> (i32, i32) {
    %c0_i32 = arith.constant 0 : i32
    %c0_i32_0 = arith.constant 0 : i32
    %c0_i32_1 = arith.constant 0 : i32
    return %c0_i32, %c0_i32_0 : i32, i32
  }
  func.func @transform_5(%arg0: i32) -> (i32, i32) {
    %c0_i32 = arith.constant 0 : i32
    %c0_i32_0 = arith.constant 0 : i32
    %c0_i32_1 = arith.constant 0 : i32
    return %c0_i32, %c0_i32_0 : i32, i32
  }
  func.func @transform_6(%arg0: i32) -> (i32, i32) {
    %c0_i32 = arith.constant 0 : i32
    %c0_i32_0 = arith.constant 0 : i32
    %c0_i32_1 = arith.constant 0 : i32
    return %c0_i32, %c0_i32_0 : i32, i32
  }
  func.func @transform_7(%arg0: i32) -> (i32, i32) {
    %c0_i32 = arith.constant 0 : i32
    %c0_i32_0 = arith.constant 0 : i32
    return %arg0, %c0_i32 : i32, i32
  }
}

</mosaic_0001>

<bundles_post_ra>
// kernel: mlp_forward.1
= control target key start
LH: loop header
LB: loop body
LE: loop exit
PB: predicated region body
PF: predicated region fallthrough
CT: control target
= control target key end

     0   :  { %12 = vsyncpa [#allocation3], 0  ;;  %s3706_s0 = inlined_call_operand.vmem [shape: f32[2,3072], index: 0, kind: input, shape index: {}]   ;;  %s3707_s1 = inlined_call_operand.hbm [shape: bf16[3072,128], index: 1, kind: input, shape index: {}]   ;;  %s3708_s2 = inlined_call_operand.vmem [shape: f32[1,128], index: 2, kind: input, shape index: {}]   ;;  %s3709_s3 = inlined_call_operand.vmem [shape: f32[128,64], index: 3, kind: input, shape index: {}]   ;;  %s3710_s4 = inlined_call_operand.vmem [shape: f32[1,64], index: 4, kind: input, shape index: {}]   ;;  %s3711_s5 = inlined_call_operand.vmem [shape: f32[64,128], index: 5, kind: input, shape index: {}]   ;;  %s3712_s6 = inlined_call_operand.vmem [shape: f32[1,128], index: 6, kind: input, shape index: {}]   ;;  %s3713_s7 = inlined_call_operand.hbm [shape: f32[2,128], index: 7, kind: output, shape index: {}]  }
   0x1   :  { %13 = vsyncpa [#allocation4], 0  ;;  %s3441_s24 = smov [#allocation2]   ;;  %s3393_s28 = scalar_lea.hbm %s3707_s1, 24576 }
   0x2   :  { %s21_s25 = sshll.u32 %s3441_s24, 4  ;;  %p3394_p0 = scmp.ne.s32.totalorder %s3707_s1, %s3393_s28  ;;  %s22_s25 = int_to_ptr.vmem [resolvable:$true] %s21_s25 }
   0x3   :  { %p3397_p1 = scmp.lt.u32.totalorder %s3393_s28, %s3707_s1 }
   0x5   :  { %p3399_p2 = pnand %p3397_p1, %p3394_p0 }
   0x7   :  { %3402 = shalt.err (!%p3399_p2)
}
   0x8   :  { %s3403_s10 = scalar_lea.vmem %s22_s25, 24576  ;;  %p3408_p4 = scmp.lt.s32.totalorder %s22_s25, %s22_s25 }
   0x9   :  { %p3404_p3 = scmp.ne.s32.totalorder %s22_s25, %s3403_s10  ;;  %p3409_p5 = scmp.lt.s32.totalorder %s3403_s10, %s3403_s10 }
   0xb   :  { %p3410_p6 = por %p3409_p5, %p3408_p4 }
   0xd   :  { %p3411_p7 = pnand %p3410_p6, %p3404_p3 }
   0xf   :  { %3414 = shalt.err (!%p3411_p7)
}
  0x10   :  { %s3442_s11 = smov 64   ;;  %s3443_s12 = smov 4  }
  0x11   :  { %27 = dma.hbm_to_vmem [thread:$0]  %s3707_s1, 24576, %s22_s25, [#allocation3], %s3442_s11, %s3442_s11, %s3443_s12  }
  0x12   :  { %3437 = dma.done.wait [#allocation3], 24576  }
  0x13   :  { %3438 = vsyncadd [#allocation3], 4294942720  ;;  %v3165_v0 = vld [vmem:[#allocation2 + $0x40] sm:$0xff]   ;;  %v3169_v4 = vld [vmem:[#allocation2 + $0x48] sm:$0xff]   ;;  %v3444_v24 = vmov 1983009808   ;;  %v97_v26 = vlaneseq }
  0x14   :  { %v3166_v1 = vld [vmem:[#allocation2 + $0xc0] sm:$0xff]   ;;  %2775 = vmatprep.subr.bf16.mxu0 %v3165_v0  ;;  %v3170_v5 = vld [vmem:[#allocation2 + $0xc8] sm:$0xff]   ;;  %v3173_v8 = vld [vmem:[#allocation2 + $0x50] sm:$0xff]   ;;  %v95_v25 = vunpack.c.l.s4 %v3444_v24  ;;  %vm3446_vm0 = vmmov 0   ;;  %vm2487_vm1 = vcmask 523264  }
  0x15   :  { %v3167_v2 = vld [vmem:[#allocation2] sm:$0xff]   ;;  %2797 = vmatprep.subr.bf16.mxu1 %v3166_v1  ;;  %v3171_v6 = vld [vmem:[#allocation2 + $0x8] sm:$0xff]   ;;  %v3174_v9 = vld [vmem:[#allocation2 + $0xd0] sm:$0xff]   ;;  %v98_v32 = vshrl.u32 %v97_v26, 7 }
  0x16   :  { %v3168_v3 = vld [vmem:[#allocation2 + $0x80] sm:$0xff]   ;;  %2776 = vmatpush3.bf16.msra.mxu0 %v3167_v2  ;;  %v3172_v7 = vld [vmem:[#allocation2 + $0x88] sm:$0xff]   ;;  %v3175_v10 = vld [vmem:[#allocation2 + $0x10] sm:$0xff]   ;;  %v96_v31 = vunpack.c.0.s8 %v95_v25 }
  0x17   :  { %2798 = vmatpush3.bf16.msra.mxu1 %v3168_v3  ;;  %2777 = vmatprep.subr.bf16.mxu0 %v3169_v4  ;;  %v3176_v11 = vld [vmem:[#allocation2 + $0x90] sm:$0xff]   ;;  %v3177_v12 = vld [vmem:[#allocation2 + $0x58] sm:$0xff]   ;;  %v3181_v16 = vld [vmem:[#allocation2 + $0x60] sm:$0xff]  }
  0x18   :  { %2799 = vmatprep.subr.bf16.mxu1 %v3170_v5  ;;  %v3178_v13 = vld [vmem:[#allocation2 + $0xd8] sm:$0xff]   ;;  %v3182_v17 = vld [vmem:[#allocation2 + $0xe0] sm:$0xff]   ;;  %v3185_v20 = vld [vmem:[#allocation2 + $0x68] sm:$0xff]   ;;  %v3503_v37 = vsub.s32 %v96_v31, %v98_v32 }
  0x19   :  { %v3179_v14 = vld [vmem:[#allocation2 + $0x18] sm:$0xff]   ;;  %v3183_v18 = vld [vmem:[#allocation2 + $0x20] sm:$0xff]   ;;  %v3186_v21 = vld [vmem:[#allocation2 + $0xe8] sm:$0xff]  }
  0x1a   :  { %2778 = vmatpush3.bf16.msra.mxu0 %v3171_v6  ;;  %v3180_v15 = vld [vmem:[#allocation2 + $0x98] sm:$0xff]   ;;  %v3184_v19 = vld [vmem:[#allocation2 + $0xa0] sm:$0xff]   ;;  %v3187_v22 = vld [vmem:[#allocation2 + $0x28] sm:$0xff]  }
  0x1b   :  { %2800 = vmatpush3.bf16.msra.mxu1 %v3172_v7  ;;  %2779 = vmatprep.subr.bf16.mxu0 %v3173_v8  ;;  %v3188_v23 = vld [vmem:[#allocation2 + $0xa8] sm:$0xff]   ;;  %v3189_v27 = vld [vmem:[#allocation2 + $0x70] sm:$0xff]   ;;  %v3193_v33 = vld [vmem:[#allocation2 + $0x78] sm:$0xff]  }
  0x1c   :  { %2801 = vmatprep.subr.bf16.mxu1 %v3174_v9  ;;  %v3190_v28 = vld [vmem:[#allocation2 + $0xf0] sm:$0xff]   ;;  %v3194_v34 = vld [vmem:[#allocation2 + $0xf8] sm:$0xff]   ;;  %v3203_v44 = vld [vmem:[#allocation2 + $0x140] sm:$0xff]  }
  0x1d   :  { %v3191_v29 = vld [vmem:[#allocation2 + $0x30] sm:$0xff]   ;;  %v3195_v35 = vld [vmem:[#allocation2 + $0x38] sm:$0xff]   ;;  %v3204_v47 = vld [vmem:[#allocation2 + $0x1c0] sm:$0xff]  }
  0x1e   :  { %2780 = vmatpush3.bf16.msra.mxu0 %v3175_v10  ;;  %v3192_v30 = vld [vmem:[#allocation2 + $0xb0] sm:$0xff]   ;;  %v3196_v36 = vld [vmem:[#allocation2 + $0xb8] sm:$0xff]   ;;  %v3205_v50 = vld [vmem:[#allocation2 + $0x100] sm:$0xff]  }
  0x1f   :  { %2802 = vmatpush3.bf16.msra.mxu1 %v3176_v11  ;;  %2781 = vmatprep.subr.bf16.mxu0 %v3177_v12  ;;  %v3197_v38 = vld [vmem:[%s3706_s0] ss:$48 sps:$4 sm:$0xff]   ;;  %v3201_v40 = vld [vmem:[%s3706_s0 + $0x4] ss:$48 sps:$4 sm:$0xff]   ;;  %v3207_v56 = vld [vmem:[#allocation2 + $0x148] sm:$0xff]  }
  0x20   :  { %2803 = vmatprep.subr.bf16.mxu1 %v3178_v13  ;;  %v3199_v39 = vld [vmem:[%s3706_s0 + $0x60] ss:$48 sps:$4 sm:$0xff]   ;;  %v3202_v41 = vld [vmem:[%s3706_s0 + $0x64] ss:$48 sps:$4 sm:$0xff]   ;;  %v100_v42 = vrot.slane %v3197_v38, %v3503_v37  ;;  %v107_v45 = vrot.slane %v3201_v40, %v3503_v37  ;;  %v3208_v59 = vld [vmem:[#allocation2 + $0x1c8] sm:$0xff]  }
  0x21   :  { %v114_v43 = vrot.slane %v3199_v39, %v3503_v37  ;;  %v121_v46 = vrot.slane %v3202_v41, %v3503_v37  ;;  %v3206_v53 = vld [vmem:[#allocation2 + $0x180] sm:$0xff]   ;;  %v3209_v60 = vld [vmem:[#allocation2 + $0x108] sm:$0xff]   ;;  %v3211_v62 = vld [vmem:[#allocation2 + $0x150] sm:$0xff]  }
  0x22   :  { %2782 = vmatpush3.bf16.msra.mxu0 %v3179_v14  ;;  %v3210_v61 = vld [vmem:[#allocation2 + $0x188] sm:$0xff]   ;;  %v3212_v63 = vld [vmem:[#allocation2 + $0x1d0] sm:$0xff]   ;;  %v3215_v2 = vld [vmem:[#allocation2 + $0x158] sm:$0xff]  }
  0x23   :  { %2804 = vmatpush3.bf16.msra.mxu1 %v3180_v15  ;;  %2783 = vmatprep.subr.bf16.mxu0 %v3181_v16  ;;  %v123_v48 = vcombine.high %v100_v42, %v114_v43  ;;  %v122_v49 = vcombine.low %v100_v42, %v114_v43  ;;  %v125_v51 = vcombine.high %v107_v45, %v121_v46  ;;  %v3213_v0 = vld [vmem:[#allocation2 + $0x110] sm:$0xff]   ;;  %v3216_v3 = vld [vmem:[#allocation2 + $0x1d8] sm:$0xff]   ;;  %v3219_v6 = vld [vmem:[#allocation2 + $0x160] sm:$0xff]  }
  0x24   :  { %2805 = vmatprep.subr.bf16.mxu1 %v3182_v17  ;;  %v124_v52 = vcombine.low %v107_v45, %v121_v46  ;;  %v3214_v1 = vld [vmem:[#allocation2 + $0x190] sm:$0xff]   ;;  %v3217_v4 = vld [vmem:[#allocation2 + $0x118] sm:$0xff]   ;;  %v3220_v7 = vld [vmem:[#allocation2 + $0x1e0] sm:$0xff]  }
  0x25   :  { %v331_v54 = vpack.c.bf16 %v123_v48, %v123_v48  ;;  %v330_v55 = vpack.c.bf16 %v122_v49, %v122_v49  ;;  %v333_v57 = vpack.c.bf16 %v125_v51, %v125_v51  ;;  %v3218_v5 = vld [vmem:[#allocation2 + $0x198] sm:$0xff]   ;;  %v3221_v8 = vld [vmem:[#allocation2 + $0x120] sm:$0xff]   ;;  %v3223_v10 = vld [vmem:[#allocation2 + $0x168] sm:$0xff]  }
  0x26   :  { %2784 = vmatpush3.bf16.msra.mxu0 %v3183_v18  ;;  %v332_v58 = vpack.c.bf16 %v124_v52, %v124_v52  ;;  %v3222_v9 = vld [vmem:[#allocation2 + $0x1a0] sm:$0xff]   ;;  %v3224_v11 = vld [vmem:[#allocation2 + $0x1e8] sm:$0xff]   ;;  %v3227_v14 = vld [vmem:[#allocation2 + $0x170] sm:$0xff]  }
  0x27   :  { %2806 = vmatpush3.bf16.msra.mxu1 %v3184_v19  ;;  %2785 = vmatprep.subr.bf16.mxu0 %v3185_v20  ;;  %v3225_v12 = vld [vmem:[#allocation2 + $0x128] sm:$0xff]   ;;  %v3228_v15 = vld [vmem:[#allocation2 + $0x1f0] sm:$0xff]   ;;  %v3231_v18 = vld [vmem:[#allocation2 + $0x178] sm:$0xff]  }
  0x28   :  { %2807 = vmatprep.subr.bf16.mxu1 %v3186_v21  ;;  %1929 = vmatprep.mubr.bf16.mxu0 %v331_v54  ;;  %v3226_v13 = vld [vmem:[#allocation2 + $0x1a8] sm:$0xff]   ;;  %v3229_v16 = vld [vmem:[#allocation2 + $0x130] sm:$0xff]   ;;  %v3232_v19 = vld [vmem:[#allocation2 + $0x1f8] sm:$0xff]  }
  0x29   :  { %1969 = vmatprep.mubr.bf16.mxu1 %v333_v57  ;;  %v3230_v17 = vld [vmem:[#allocation2 + $0x1b0] sm:$0xff]   ;;  %v3233_v20 = vld [vmem:[#allocation2 + $0x138] sm:$0xff]   ;;  %v3242_v31 = vld [vmem:[#allocation2 + $0x2c0] sm:$0xff]  }
  0x2a   :  { %2786 = vmatpush3.bf16.msra.mxu0 %v3187_v22  ;;  %v3234_v21 = vld [vmem:[#allocation2 + $0x1b8] sm:$0xff]   ;;  %v3244_v38 = vld [vmem:[#allocation2 + $0x280] sm:$0xff]   ;;  %v3245_v41 = vld [vmem:[#allocation2 + $0x248] sm:$0xff]  }
  0x2b   :  { %2808 = vmatpush3.bf16.msra.mxu1 %v3188_v23  ;;  %2787 = vmatprep.subr.bf16.mxu0 %v3189_v27  ;;  %v3235_v22 = vld [vmem:[%s3706_s0 + $0x8] ss:$48 sps:$4 sm:$0xff]   ;;  %v3239_v24 = vld [vmem:[%s3706_s0 + $0xc] ss:$48 sps:$4 sm:$0xff]   ;;  %v3250_v48 = vld [vmem:[#allocation2 + $0x2d0] sm:$0xff]  }
  0x2c   :  { %2809 = vmatprep.subr.bf16.mxu1 %v3190_v28  ;;  %v3237_v23 = vld [vmem:[%s3706_s0 + $0x68] ss:$48 sps:$4 sm:$0xff]   ;;  %v3240_v25 = vld [vmem:[%s3706_s0 + $0x6c] ss:$48 sps:$4 sm:$0xff]   ;;  %v136_v26 = vrot.slane %v3235_v22, %v3503_v37  ;;  %v143_v28 = vrot.slane %v3239_v24, %v3503_v37  ;;  %v3251_v49 = vld [vmem:[#allocation2 + $0x210] sm:$0xff]  }
  0x2d   :  { %v150_v27 = vrot.slane %v3237_v23, %v3503_v37  ;;  %v3247_v45 = vld [vmem:[#allocation2 + $0x208] sm:$0xff]   ;;  %v3253_v51 = vld [vmem:[#allocation2 + $0x258] sm:$0xff]   ;;  %v3259_v57 = vld [vmem:[#allocation2 + $0x220] sm:$0xff]  }
  0x2e   :  { %2788 = vmatpush3.bf16.msra.mxu0 %v3191_v29  ;;  %v3241_v29 = vld [vmem:[#allocation2 + $0x240] sm:$0xff]   ;;  %v3248_v46 = vld [vmem:[#allocation2 + $0x288] sm:$0xff]   ;;  %v3254_v52 = vld [vmem:[#allocation2 + $0x2d8] sm:$0xff]  }
  0x2f   :  { %2810 = vmatpush3.bf16.msra.mxu1 %v3192_v30  ;;  %2789 = vmatprep.subr.bf16.mxu0 %v3193_v33  ;;  %v157_v30 = vrot.slane %v3240_v25, %v3503_v37  ;;  %v159_v32 = vcombine.high %v136_v26, %v150_v27  ;;  %v158_v33 = vcombine.low %v136_v26, %v150_v27  ;;  %v3256_v54 = vld [vmem:[#allocation2 + $0x298] sm:$0xff]   ;;  %v3282_v22 = vld [vmem:[#allocation2 + $0x380] sm:$0xff]   ;;  %v3283_v27 = vld [vmem:[#allocation2 + $0x348] sm:$0xff]  }
  0x30   :  { %2811 = vmatprep.subr.bf16.mxu1 %v3194_v34  ;;  %v3243_v34 = vld [vmem:[#allocation2 + $0x200] sm:$0xff]  }
  0x31   :  { %v335_v39 = vpack.c.bf16 %v159_v32, %v159_v32  ;;  %v334_v40 = vpack.c.bf16 %v158_v33, %v158_v33  ;;  %v3288_v32 = vld [vmem:[#allocation2 + $0x3d0] sm:$0xff]  }
  0x32   :  { %2790 = vmatpush3.bf16.msra.mxu0 %v3195_v35  ;;  %v161_v35 = vcombine.high %v143_v28, %v157_v30  ;;  %v3289_v33 = vld [vmem:[#allocation2 + $0x310] sm:$0xff]  }
  0x33   :  { %2812 = vmatpush3.bf16.msra.mxu1 %v3196_v36  ;;  %2819 = vmatprep.subr.bf16.mxu0 %v3203_v44  ;;  %v160_v36 = vcombine.low %v143_v28, %v157_v30  ;;  %v3246_v44 = vld [vmem:[#allocation2 + $0x2c8] sm:$0xff]  }
  0x34   :  { %2841 = vmatprep.subr.bf16.mxu1 %v3204_v47  ;;  %v337_v42 = vpack.c.bf16 %v161_v35, %v161_v35  ;;  %v3249_v47 = vld [vmem:[#allocation2 + $0x250] sm:$0xff]   ;;  %v3284_v28 = vld [vmem:[#allocation2 + $0x3c8] sm:$0xff]   ;;  %v3291_v35 = vld [vmem:[#allocation2 + $0x358] sm:$0xff]  }
  0x35   :  { %1930 = vmatmul.mubr.bf16.vlgmr.msra.gmra.mrb[0].mxu0 %v330_v55  ;;  %v336_v43 = vpack.c.bf16 %v160_v36, %v160_v36  ;;  %v3257_v55 = vld [vmem:[#allocation2 + $0x260] sm:$0xff]   ;;  %v3286_v30 = vld [vmem:[#allocation2 + $0x388] sm:$0xff]   ;;  %v3292_v36 = vld [vmem:[#allocation2 + $0x3d8] sm:$0xff]  }
  0x36   :  { %1970 = vmatmul.mubr.bf16.vlgmr.msra.gmra.mrb[0].mxu1 %v332_v58  ;;  %2820 = vmatpush3.bf16.msra.mxu0 %v3205_v50  ;;  %v3252_v50 = vld [vmem:[#allocation2 + $0x290] sm:$0xff]   ;;  %v3260_v58 = vld [vmem:[#allocation2 + $0x2a0] sm:$0xff]  }
  0x37   :  { %2842 = vmatpush3.bf16.msra.mxu1 %v3206_v53  ;;  %2821 = vmatprep.subr.bf16.mxu0 %v3207_v56  ;;  %v3255_v53 = vld [vmem:[#allocation2 + $0x218] sm:$0xff]   ;;  %v3258_v56 = vld [vmem:[#allocation2 + $0x2e0] sm:$0xff]  }
  0x38   :  { %2843 = vmatprep.subr.bf16.mxu1 %v3208_v59  ;;  %2009 = vmatprep.mubr.bf16.mxu0 %v335_v39  ;;  %v3261_v59 = vld [vmem:[#allocation2 + $0x268] sm:$0xff]   ;;  %v3294_v39 = vld [vmem:[#allocation2 + $0x398] sm:$0xff]  }
  0x39   :  { %2049 = vmatprep.mubr.bf16.mxu1 %v337_v42  ;;  %v3297_v42 = vld [vmem:[#allocation2 + $0x320] sm:$0xff]  }
  0x3a   :  { %2822 = vmatpush3.bf16.msra.mxu0 %v3209_v60  ;;  %v3262_v60 = vld [vmem:[#allocation2 + $0x2e8] sm:$0xff]  }
  0x3b   :  { %2844 = vmatpush3.bf16.msra.mxu1 %v3210_v61  ;;  %2823 = vmatprep.subr.bf16.mxu0 %v3211_v62  ;;  %v3263_v61 = vld [vmem:[#allocation2 + $0x228] sm:$0xff]  }
  0x3c   :  { %2845 = vmatprep.subr.bf16.mxu1 %v3212_v63  ;;  %v3264_v62 = vld [vmem:[#allocation2 + $0x2a8] sm:$0xff]   ;;  %v3265_v63 = vld [vmem:[#allocation2 + $0x270] sm:$0xff]  }
  0x3e   :  { %2824 = vmatpush3.bf16.msra.mxu0 %v3213_v0  ;;  %v3266_v0 = vld [vmem:[#allocation2 + $0x2f0] sm:$0xff]  }
  0x3f   :  { %2846 = vmatpush3.bf16.msra.mxu1 %v3214_v1  ;;  %2825 = vmatprep.subr.bf16.mxu0 %v3215_v2  ;;  %v3267_v1 = vld [vmem:[#allocation2 + $0x230] sm:$0xff]  }
  0x40   :  { %2847 = vmatprep.subr.bf16.mxu1 %v3216_v3  ;;  %v3268_v2 = vld [vmem:[#allocation2 + $0x2b0] sm:$0xff]   ;;  %v3269_v3 = vld [vmem:[#allocation2 + $0x278] sm:$0xff]  }
  0x42   :  { %2826 = vmatpush3.bf16.msra.mxu0 %v3217_v4  ;;  %v3270_v4 = vld [vmem:[#allocation2 + $0x2f8] sm:$0xff]  }
  0x43   :  { %2848 = vmatpush3.bf16.msra.mxu1 %v3218_v5  ;;  %2827 = vmatprep.subr.bf16.mxu0 %v3219_v6  ;;  %v3271_v5 = vld [vmem:[#allocation2 + $0x238] sm:$0xff]  }
  0x44   :  { %2849 = vmatprep.subr.bf16.mxu1 %v3220_v7  ;;  %v3272_v6 = vld [vmem:[#allocation2 + $0x2b8] sm:$0xff]   ;;  %v3273_v7 = vld [vmem:[%s3706_s0 + $0x10] ss:$48 sps:$4 sm:$0xff]  }
  0x46   :  { %2828 = vmatpush3.bf16.msra.mxu0 %v3221_v8  ;;  %v3275_v8 = vld [vmem:[%s3706_s0 + $0x70] ss:$48 sps:$4 sm:$0xff]  }
  0x47   :  { %2850 = vmatpush3.bf16.msra.mxu1 %v3222_v9  ;;  %2829 = vmatprep.subr.bf16.mxu0 %v3223_v10  ;;  %v3277_v9 = vld [vmem:[%s3706_s0 + $0x14] ss:$48 sps:$4 sm:$0xff]  }
  0x48   :  { %2851 = vmatprep.subr.bf16.mxu1 %v3224_v11  ;;  %v3278_v10 = vld [vmem:[%s3706_s0 + $0x74] ss:$48 sps:$4 sm:$0xff]   ;;  %v172_v11 = vrot.slane %v3273_v7, %v3503_v37 }
  0x49   :  { %v3320_v7 = vld [vmem:[#allocation2 + $0x480] sm:$0xff]  }
  0x4a   :  { %2830 = vmatpush3.bf16.msra.mxu0 %v3225_v12  ;;  %v3279_v12 = vld [vmem:[#allocation2 + $0x340] sm:$0xff]  }
  0x4b   :  { %2852 = vmatpush3.bf16.msra.mxu1 %v3226_v13  ;;  %2831 = vmatprep.subr.bf16.mxu0 %v3227_v14  ;;  %v186_v13 = vrot.slane %v3275_v8, %v3503_v37  ;;  %v179_v14 = vrot.slane %v3277_v9, %v3503_v37 }
  0x4c   :  { %2853 = vmatprep.subr.bf16.mxu1 %v3228_v15  ;;  %v193_v15 = vrot.slane %v3278_v10, %v3503_v37  ;;  %v3321_v10 = vld [vmem:[#allocation2 + $0x448] sm:$0xff]  }
  0x4e   :  { %2832 = vmatpush3.bf16.msra.mxu0 %v3229_v16  ;;  %v3280_v16 = vld [vmem:[#allocation2 + $0x3c0] sm:$0xff]  }
  0x4f   :  { %2854 = vmatpush3.bf16.msra.mxu1 %v3230_v17  ;;  %2833 = vmatprep.subr.bf16.mxu0 %v3231_v18  ;;  %v195_v17 = vcombine.high %v172_v11, %v186_v13  ;;  %v197_v18 = vcombine.high %v179_v14, %v193_v15 }
  0x50   :  { %2855 = vmatprep.subr.bf16.mxu1 %v3232_v19  ;;  %v194_v19 = vcombine.low %v172_v11, %v186_v13  ;;  %v3322_v13 = vld [vmem:[#allocation2 + $0x4c8] sm:$0xff]  }
  0x51   :  { %v339_v23 = vpack.c.bf16 %v195_v17, %v195_v17  ;;  %v341_v24 = vpack.c.bf16 %v197_v18, %v197_v18  ;;  %v3326_v17 = vld [vmem:[#allocation2 + $0x4d0] sm:$0xff]  }
  0x52   :  { %2834 = vmatpush3.bf16.msra.mxu0 %v3233_v20  ;;  %v196_v20 = vcombine.low %v179_v14, %v193_v15  ;;  %v338_v25 = vpack.c.bf16 %v194_v19, %v194_v19  ;;  %v3323_v14 = vld [vmem:[#allocation2 + $0x408] sm:$0xff]   ;;  %v3327_v18 = vld [vmem:[#allocation2 + $0x410] sm:$0xff]  }
  0x53   :  { %2856 = vmatpush3.bf16.msra.mxu1 %v3234_v21  ;;  %2863 = vmatprep.subr.bf16.mxu0 %v3241_v29  ;;  %v3281_v21 = vld [vmem:[#allocation2 + $0x300] sm:$0xff]   ;;  %v3285_v29 = vld [vmem:[#allocation2 + $0x308] sm:$0xff]   ;;  %v3328_v19 = vld [vmem:[#allocation2 + $0x490] sm:$0xff]  }
  0x54   :  { %2885 = vmatprep.subr.bf16.mxu1 %v3242_v31  ;;  %v340_v26 = vpack.c.bf16 %v196_v20, %v196_v20  ;;  %v3287_v31 = vld [vmem:[#allocation2 + $0x350] sm:$0xff]   ;;  %v3324_v15 = vld [vmem:[#allocation2 + $0x488] sm:$0xff]   ;;  %v3329_v20 = vld [vmem:[#allocation2 + $0x458] sm:$0xff]  }
  0x55   :  { %2010 = vmatmul.mubr.bf16.vlgmr.msra.gmra.mrb[4].mxu0 %v334_v40  ;;  %v3295_v40 = vld [vmem:[#allocation2 + $0x360] sm:$0xff]  }
  0x56   :  { %2050 = vmatmul.mubr.bf16.vlgmr.msra.gmra.mrb[4].mxu1 %v336_v43  ;;  %2864 = vmatpush3.bf16.msra.mxu0 %v3243_v34  ;;  %v3290_v34 = vld [vmem:[#allocation2 + $0x390] sm:$0xff]   ;;  %v3298_v43 = vld [vmem:[#allocation2 + $0x3a0] sm:$0xff]  }
  0x57   :  { %2886 = vmatpush3.bf16.msra.mxu1 %v3244_v38  ;;  %2865 = vmatprep.subr.bf16.mxu0 %v3245_v41  ;;  %v3293_v38 = vld [vmem:[#allocation2 + $0x318] sm:$0xff]   ;;  %v3296_v41 = vld [vmem:[#allocation2 + $0x3e0] sm:$0xff]  }
  0x58   :  { %2887 = vmatprep.subr.bf16.mxu1 %v3246_v44  ;;  %2089 = vmatprep.mubr.bf16.mxu0 %v339_v23  ;;  %v3299_v44 = vld [vmem:[#allocation2 + $0x368] sm:$0xff]   ;;  %v3332_v23 = vld [vmem:[#allocation2 + $0x498] sm:$0xff]  }
  0x59   :  { %2129 = vmatprep.mubr.bf16.mxu1 %v341_v24  ;;  %v3333_v24 = vld [vmem:[#allocation2 + $0x460] sm:$0xff]  }
  0x5a   :  { %2866 = vmatpush3.bf16.msra.mxu0 %v3247_v45  ;;  %v3300_v45 = vld [vmem:[#allocation2 + $0x3e8] sm:$0xff]  }
  0x5b   :  { %2888 = vmatpush3.bf16.msra.mxu1 %v3248_v46  ;;  %2867 = vmatprep.subr.bf16.mxu0 %v3249_v47  ;;  %v3301_v46 = vld [vmem:[#allocation2 + $0x328] sm:$0xff]  }
  0x5c   :  { %2889 = vmatprep.subr.bf16.mxu1 %v3250_v48  ;;  %v3302_v47 = vld [vmem:[#allocation2 + $0x3a8] sm:$0xff]   ;;  %v3303_v48 = vld [vmem:[#allocation2 + $0x370] sm:$0xff]  }
  0x5e   :  { %2868 = vmatpush3.bf16.msra.mxu0 %v3251_v49  ;;  %v3304_v49 = vld [vmem:[#allocation2 + $0x3f0] sm:$0xff]  }
  0x5f   :  { %2890 = vmatpush3.bf16.msra.mxu1 %v3252_v50  ;;  %2869 = vmatprep.subr.bf16.mxu0 %v3253_v51  ;;  %v3305_v50 = vld [vmem:[#allocation2 + $0x330] sm:$0xff]  }
  0x60   :  { %2891 = vmatprep.subr.bf16.mxu1 %v3254_v52  ;;  %v3306_v51 = vld [vmem:[#allocation2 + $0x3b0] sm:$0xff]   ;;  %v3307_v52 = vld [vmem:[#allocation2 + $0x378] sm:$0xff]  }
  0x62   :  { %2870 = vmatpush3.bf16.msra.mxu0 %v3255_v53  ;;  %v3308_v53 = vld [vmem:[#allocation2 + $0x3f8] sm:$0xff]  }
  0x63   :  { %2892 = vmatpush3.bf16.msra.mxu1 %v3256_v54  ;;  %2871 = vmatprep.subr.bf16.mxu0 %v3257_v55  ;;  %v3309_v54 = vld [vmem:[#allocation2 + $0x338] sm:$0xff]  }
  0x64   :  { %2893 = vmatprep.subr.bf16.mxu1 %v3258_v56  ;;  %v3310_v55 = vld [vmem:[#allocation2 + $0x3b8] sm:$0xff]  }
  0x65   :  { %v3311_v56 = vld [vmem:[%s3706_s0 + $0x18] ss:$48 sps:$4 sm:$0xff]  }
  0x66   :  { %2872 = vmatpush3.bf16.msra.mxu0 %v3259_v57  ;;  %v3313_v57 = vld [vmem:[%s3706_s0 + $0x78] ss:$48 sps:$4 sm:$0xff]  }
  0x67   :  { %2894 = vmatpush3.bf16.msra.mxu1 %v3260_v58  ;;  %2873 = vmatprep.subr.bf16.mxu0 %v3261_v59  ;;  %v3315_v58 = vld [vmem:[%s3706_s0 + $0x1c] ss:$48 sps:$4 sm:$0xff]  }
  0x68   :  { %2895 = vmatprep.subr.bf16.mxu1 %v3262_v60  ;;  %v3316_v59 = vld [vmem:[%s3706_s0 + $0x7c] ss:$48 sps:$4 sm:$0xff]   ;;  %v208_v60 = vrot.slane %v3311_v56, %v3503_v37  ;;  %v3358_v56 = vld [vmem:[#allocation2 + $0x580] sm:$0xff]  }
  0x6a   :  { %2874 = vmatpush3.bf16.msra.mxu0 %v3263_v61  ;;  %v222_v61 = vrot.slane %v3313_v57, %v3503_v37 }
  0x6b   :  { %2896 = vmatpush3.bf16.msra.mxu1 %v3264_v62  ;;  %2875 = vmatprep.subr.bf16.mxu0 %v3265_v63  ;;  %v3317_v62 = vld [vmem:[#allocation2 + $0x440] sm:$0xff]   ;;  %v215_v63 = vrot.slane %v3315_v58, %v3503_v37 }
  0x6c   :  { %2897 = vmatprep.subr.bf16.mxu1 %v3266_v0  ;;  %v229_v0 = vrot.slane %v3316_v59, %v3503_v37  ;;  %v3359_v59 = vld [vmem:[#allocation2 + $0x548] sm:$0xff]  }
  0x6e   :  { %2876 = vmatpush3.bf16.msra.mxu0 %v3267_v1  ;;  %v3318_v1 = vld [vmem:[#allocation2 + $0x4c0] sm:$0xff]  }
  0x6f   :  { %2898 = vmatpush3.bf16.msra.mxu1 %v3268_v2  ;;  %2877 = vmatprep.subr.bf16.mxu0 %v3269_v3  ;;  %v231_v2 = vcombine.high %v208_v60, %v222_v61  ;;  %v230_v3 = vcombine.low %v208_v60, %v222_v61 }
  0x70   :  { %2899 = vmatprep.subr.bf16.mxu1 %v3270_v4  ;;  %v3319_v4 = vld [vmem:[#allocation2 + $0x400] sm:$0xff]  }
  0x71   :  { %v343_v8 = vpack.c.bf16 %v231_v2, %v231_v2  ;;  %v342_v9 = vpack.c.bf16 %v230_v3, %v230_v3  ;;  %v3364_v2 = vld [vmem:[#allocation2 + $0x5d0] sm:$0xff]  }
  0x72   :  { %2878 = vmatpush3.bf16.msra.mxu0 %v3271_v5  ;;  %v233_v5 = vcombine.high %v215_v63, %v229_v0  ;;  %v3365_v3 = vld [vmem:[#allocation2 + $0x510] sm:$0xff]  }
  0x73   :  { %2900 = vmatpush3.bf16.msra.mxu1 %v3272_v6  ;;  %2907 = vmatprep.subr.bf16.mxu0 %v3279_v12  ;;  %v232_v6 = vcombine.low %v215_v63, %v229_v0  ;;  %v3361_v63 = vld [vmem:[#allocation2 + $0x508] sm:$0xff]  }
  0x74   :  { %2929 = vmatprep.subr.bf16.mxu1 %v3280_v16  ;;  %v345_v11 = vpack.c.bf16 %v233_v5, %v233_v5  ;;  %v3325_v16 = vld [vmem:[#allocation2 + $0x450] sm:$0xff]   ;;  %v3362_v0 = vld [vmem:[#allocation2 + $0x588] sm:$0xff]   ;;  %v3367_v5 = vld [vmem:[#allocation2 + $0x558] sm:$0xff]  }
  0x75   :  { %2090 = vmatmul.mubr.bf16.vlgmr.msra.gmra.mrb[8].mxu0 %v338_v25  ;;  %v344_v12 = vpack.c.bf16 %v232_v6, %v232_v6  ;;  %v3334_v25 = vld [vmem:[#allocation2 + $0x4e0] sm:$0xff]   ;;  %v3368_v6 = vld [vmem:[#allocation2 + $0x5d8] sm:$0xff]  }
  0x76   :  { %2130 = vmatmul.mubr.bf16.vlgmr.msra.gmra.mrb[8].mxu1 %v340_v26  ;;  %2908 = vmatpush3.bf16.msra.mxu0 %v3281_v21  ;;  %v3330_v21 = vld [vmem:[#allocation2 + $0x4d8] sm:$0xff]   ;;  %v3335_v26 = vld [vmem:[#allocation2 + $0x420] sm:$0xff]  }
  0x77   :  { %2930 = vmatpush3.bf16.msra.mxu1 %v3282_v22  ;;  %2909 = vmatprep.subr.bf16.mxu0 %v3283_v27  ;;  %v3331_v22 = vld [vmem:[#allocation2 + $0x418] sm:$0xff]   ;;  %v3336_v27 = vld [vmem:[#allocation2 + $0x4a0] sm:$0xff]  }
  0x78   :  { %2931 = vmatprep.subr.bf16.mxu1 %v3284_v28  ;;  %2169 = vmatprep.mubr.bf16.mxu0 %v343_v8  ;;  %v3337_v28 = vld [vmem:[#allocation2 + $0x468] sm:$0xff]   ;;  %v3370_v8 = vld [vmem:[#allocation2 + $0x598] sm:$0xff]  }
  0x79   :  { %2209 = vmatprep.mubr.bf16.mxu1 %v345_v11  ;;  %v3373_v11 = vld [vmem:[#allocation2 + $0x520] sm:$0xff]  }
  0x7a   :  { %2910 = vmatpush3.bf16.msra.mxu0 %v3285_v29  ;;  %v3338_v29 = vld [vmem:[#allocation2 + $0x4e8] sm:$0xff]  }
  0x7b   :  { %2932 = vmatpush3.bf16.msra.mxu1 %v3286_v30  ;;  %2911 = vmatprep.subr.bf16.mxu0 %v3287_v31  ;;  %v3339_v30 = vld [vmem:[#allocation2 + $0x428] sm:$0xff]  }
  0x7c   :  { %2933 = vmatprep.subr.bf16.mxu1 %v3288_v32  ;;  %v3340_v31 = vld [vmem:[#allocation2 + $0x4a8] sm:$0xff]   ;;  %v3341_v32 = vld [vmem:[#allocation2 + $0x470] sm:$0xff]  }
  0x7e   :  { %2912 = vmatpush3.bf16.msra.mxu0 %v3289_v33  ;;  %v3342_v33 = vld [vmem:[#allocation2 + $0x4f0] sm:$0xff]  }
  0x7f   :  { %2934 = vmatpush3.bf16.msra.mxu1 %v3290_v34  ;;  %2913 = vmatprep.subr.bf16.mxu0 %v3291_v35  ;;  %v3343_v34 = vld [vmem:[#allocation2 + $0x430] sm:$0xff]  }
  0x80   :  { %2935 = vmatprep.subr.bf16.mxu1 %v3292_v36  ;;  %v3344_v35 = vld [vmem:[#allocation2 + $0x4b0] sm:$0xff]   ;;  %v3345_v36 = vld [vmem:[#allocation2 + $0x478] sm:$0xff]  }
  0x82   :  { %2914 = vmatpush3.bf16.msra.mxu0 %v3293_v38  ;;  %v3346_v38 = vld [vmem:[#allocation2 + $0x4f8] sm:$0xff]  }
  0x83   :  { %2936 = vmatpush3.bf16.msra.mxu1 %v3294_v39  ;;  %2915 = vmatprep.subr.bf16.mxu0 %v3295_v40  ;;  %v3347_v39 = vld [vmem:[#allocation2 + $0x438] sm:$0xff]  }
  0x84   :  { %2937 = vmatprep.subr.bf16.mxu1 %v3296_v41  ;;  %v3348_v40 = vld [vmem:[#allocation2 + $0x4b8] sm:$0xff]   ;;  %v3349_v41 = vld [vmem:[%s3706_s0 + $0x20] ss:$48 sps:$4 sm:$0xff]  }
  0x86   :  { %2916 = vmatpush3.bf16.msra.mxu0 %v3297_v42  ;;  %v3351_v42 = vld [vmem:[%s3706_s0 + $0x80] ss:$48 sps:$4 sm:$0xff]  }
  0x87   :  { %2938 = vmatpush3.bf16.msra.mxu1 %v3298_v43  ;;  %2917 = vmatprep.subr.bf16.mxu0 %v3299_v44  ;;  %v3353_v43 = vld [vmem:[%s3706_s0 + $0x24] ss:$48 sps:$4 sm:$0xff]  }
  0x88   :  { %2939 = vmatprep.subr.bf16.mxu1 %v3300_v45  ;;  %v3354_v44 = vld [vmem:[%s3706_s0 + $0x84] ss:$48 sps:$4 sm:$0xff]   ;;  %v244_v45 = vrot.slane %v3349_v41, %v3503_v37 }
  0x8a   :  { %2918 = vmatpush3.bf16.msra.mxu0 %v3301_v46  ;;  %v258_v46 = vrot.slane %v3351_v42, %v3503_v37 }
  0x8b   :  { %2940 = vmatpush3.bf16.msra.mxu1 %v3302_v47  ;;  %2919 = vmatprep.subr.bf16.mxu0 %v3303_v48  ;;  %v251_v47 = vrot.slane %v3353_v43, %v3503_v37  ;;  %v3355_v48 = vld [vmem:[#allocation2 + $0x540] sm:$0xff]  }
  0x8c   :  { %2941 = vmatprep.subr.bf16.mxu1 %v3304_v49  ;;  %v265_v49 = vrot.slane %v3354_v44, %v3503_v37 }
  0x8e   :  { %2920 = vmatpush3.bf16.msra.mxu0 %v3305_v50  ;;  %v3356_v50 = vld [vmem:[#allocation2 + $0x5c0] sm:$0xff]  }
  0x8f   :  { %2942 = vmatpush3.bf16.msra.mxu1 %v3306_v51  ;;  %2921 = vmatprep.subr.bf16.mxu0 %v3307_v52  ;;  %v267_v51 = vcombine.high %v244_v45, %v258_v46  ;;  %v266_v52 = vcombine.low %v244_v45, %v258_v46 }
  0x90   :  { %2943 = vmatprep.subr.bf16.mxu1 %v3308_v53  ;;  %v3357_v53 = vld [vmem:[#allocation2 + $0x500] sm:$0xff]  }
  0x91   :  { %v347_v57 = vpack.c.bf16 %v267_v51, %v267_v51  ;;  %v346_v58 = vpack.c.bf16 %v266_v52, %v266_v52 }
  0x92   :  { %2922 = vmatpush3.bf16.msra.mxu0 %v3309_v54  ;;  %v269_v54 = vcombine.high %v251_v47, %v265_v49 }
  0x93   :  { %2944 = vmatpush3.bf16.msra.mxu1 %v3310_v55  ;;  %2951 = vmatprep.subr.bf16.mxu0 %v3317_v62  ;;  %v268_v55 = vcombine.low %v251_v47, %v265_v49  ;;  %v3360_v62 = vld [vmem:[#allocation2 + $0x5c8] sm:$0xff]  }
  0x94   :  { %2973 = vmatprep.subr.bf16.mxu1 %v3318_v1  ;;  %v349_v60 = vpack.c.bf16 %v269_v54, %v269_v54  ;;  %v3363_v1 = vld [vmem:[#allocation2 + $0x550] sm:$0xff]   ;;  %v2378_v54 = vld [vmem:[%s3709_s3] sm:$0xff] }
  0x95   :  { %2170 = vmatmul.mubr.bf16.vlgmr.msra.gmra.mrb[12].mxu0 %v342_v9  ;;  %v348_v61 = vpack.c.bf16 %v268_v55, %v268_v55  ;;  %v3371_v9 = vld [vmem:[#allocation2 + $0x560] sm:$0xff]   ;;  %v2379_v55 = vld [vmem:[%s3709_s3 + $0x8] sm:$0xff] }
  0x96   :  { %2210 = vmatmul.mubr.bf16.vlgmr.msra.gmra.mrb[12].mxu1 %v344_v12  ;;  %2952 = vmatpush3.bf16.msra.mxu0 %v3319_v4  ;;  %v3366_v4 = vld [vmem:[#allocation2 + $0x590] sm:$0xff]   ;;  %v3374_v12 = vld [vmem:[#allocation2 + $0x5a0] sm:$0xff]  }
  0x97   :  { %2974 = vmatpush3.bf16.msra.mxu1 %v3320_v7  ;;  %2953 = vmatprep.subr.bf16.mxu0 %v3321_v10  ;;  %v3369_v7 = vld [vmem:[#allocation2 + $0x518] sm:$0xff]   ;;  %v3372_v10 = vld [vmem:[#allocation2 + $0x5e0] sm:$0xff]  }
  0x98   :  { %2975 = vmatprep.subr.bf16.mxu1 %v3322_v13  ;;  %2249 = vmatprep.mubr.bf16.mxu0 %v347_v57  ;;  %v3375_v13 = vld [vmem:[#allocation2 + $0x568] sm:$0xff]   ;;  %v3445_v57 = vmov 0.0|0.0  }
  0x99   :  { %2289 = vmatprep.mubr.bf16.mxu1 %v349_v60 }
  0x9a   :  { %2954 = vmatpush3.bf16.msra.mxu0 %v3323_v14  ;;  %v3376_v14 = vld [vmem:[#allocation2 + $0x5e8] sm:$0xff]  }
  0x9b   :  { %2976 = vmatpush3.bf16.msra.mxu1 %v3324_v15  ;;  %2955 = vmatprep.subr.bf16.mxu0 %v3325_v16  ;;  %v3377_v15 = vld [vmem:[#allocation2 + $0x528] sm:$0xff]  }
  0x9c   :  { %2977 = vmatprep.subr.bf16.mxu1 %v3326_v17  ;;  %v3378_v16 = vld [vmem:[#allocation2 + $0x5a8] sm:$0xff]   ;;  %v3379_v17 = vld [vmem:[#allocation2 + $0x570] sm:$0xff]  }
  0x9e   :  { %2956 = vmatpush3.bf16.msra.mxu0 %v3327_v18  ;;  %v3380_v18 = vld [vmem:[#allocation2 + $0x5f0] sm:$0xff]  }
  0x9f   :  { %2978 = vmatpush3.bf16.msra.mxu1 %v3328_v19  ;;  %2957 = vmatprep.subr.bf16.mxu0 %v3329_v20  ;;  %v3381_v19 = vld [vmem:[#allocation2 + $0x530] sm:$0xff]  }
  0xa0   :  { %2979 = vmatprep.subr.bf16.mxu1 %v3330_v21  ;;  %v3382_v20 = vld [vmem:[#allocation2 + $0x5b0] sm:$0xff]   ;;  %v3383_v21 = vld [vmem:[#allocation2 + $0x578] sm:$0xff]  }
  0xa2   :  { %2958 = vmatpush3.bf16.msra.mxu0 %v3331_v22  ;;  %v3384_v22 = vld [vmem:[#allocation2 + $0x5f8] sm:$0xff]  }
  0xa3   :  { %2980 = vmatpush3.bf16.msra.mxu1 %v3332_v23  ;;  %2959 = vmatprep.subr.bf16.mxu0 %v3333_v24  ;;  %v3385_v23 = vld [vmem:[#allocation2 + $0x538] sm:$0xff]  }
  0xa4   :  { %2981 = vmatprep.subr.bf16.mxu1 %v3334_v25  ;;  %v3386_v24 = vld [vmem:[#allocation2 + $0x5b8] sm:$0xff]  }
  0xa5   :  { %v3387_v25 = vld [vmem:[%s3706_s0 + $0x28] ss:$48 sps:$4 sm:$0xff]  }
  0xa6   :  { %2960 = vmatpush3.bf16.msra.mxu0 %v3335_v26  ;;  %v3389_v26 = vld [vmem:[%s3706_s0 + $0x88] ss:$48 sps:$4 sm:$0xff]  }
  0xa7   :  { %2982 = vmatpush3.bf16.msra.mxu1 %v3336_v27  ;;  %2961 = vmatprep.subr.bf16.mxu0 %v3337_v28  ;;  %v3391_v27 = vld [vmem:[%s3706_s0 + $0x2c] ss:$48 sps:$4 sm:$0xff]  }
  0xa8   :  { %2983 = vmatprep.subr.bf16.mxu1 %v3338_v29  ;;  %v3392_v28 = vld [vmem:[%s3706_s0 + $0x8c] ss:$48 sps:$4 sm:$0xff]   ;;  %v280_v29 = vrot.slane %v3387_v25, %v3503_v37 }
  0xa9   :  { %v2393_v25 = vld [vmem:[%s3709_s3 + $0x78] sm:$0xff] }
  0xaa   :  { %2962 = vmatpush3.bf16.msra.mxu0 %v3339_v30  ;;  %v294_v30 = vrot.slane %v3389_v26, %v3503_v37 }
  0xab   :  { %2984 = vmatpush3.bf16.msra.mxu1 %v3340_v31  ;;  %2963 = vmatprep.subr.bf16.mxu0 %v3341_v32  ;;  %v287_v31 = vrot.slane %v3391_v27, %v3503_v37  ;;  %v301_v32 = vrot.slane %v3392_v28, %v3503_v37  ;;  %v2579_v37 = vld [vmem:[%s3708_s2] ss:$0 sm:$0xff]  ;;  %v3447_v27 = vmov 0.0  }
  0xac   :  { %2985 = vmatprep.subr.bf16.mxu1 %v3342_v33  ;;  %v303_v33 = vcombine.high %v280_v29, %v294_v30  ;;  %v2472_v28 = vld [vmem:[%s3711_s5] sm:$0xff] }
  0xae   :  { %2964 = vmatpush3.bf16.msra.mxu0 %v3343_v34  ;;  %v305_v34 = vcombine.high %v287_v31, %v301_v32 }
  0xaf   :  { %2986 = vmatpush3.bf16.msra.mxu1 %v3344_v35  ;;  %2965 = vmatprep.subr.bf16.mxu0 %v3345_v36  ;;  %v302_v35 = vcombine.low %v280_v29, %v294_v30  ;;  %v304_v36 = vcombine.low %v287_v31, %v301_v32  ;;  %v2473_v29 = vld [vmem:[%s3711_s5 + $0x8] sm:$0xff]  ;;  %v2474_v30 = vld [vmem:[%s3711_s5 + $0x10] sm:$0xff]  ;;  %v2475_v32 = vld [vmem:[%s3711_s5 + $0x18] sm:$0xff] }
  0xb0   :  { %2987 = vmatprep.subr.bf16.mxu1 %v3346_v38  ;;  %v351_v38 = vpack.c.bf16 %v303_v33, %v303_v33  ;;  %v3144_v31 = vpack.c.bf16 %v2473_v29, %v2472_v28  ;;  %v3147_v33 = vpack.c.bf16 %v2475_v32, %v2474_v30  ;;  %v2773_v30 = vld [vmem:[%s3712_s6] ss:$0 sm:$0xff] }
  0xb1   :  { %v352_v41 = vpack.c.bf16 %v304_v36, %v304_v36 }
  0xb2   :  { %2966 = vmatpush3.bf16.msra.mxu0 %v3347_v39  ;;  %v353_v39 = vpack.c.bf16 %v305_v34, %v305_v34  ;;  %v2476_v34 = vld [vmem:[%s3711_s5 + $0x20] sm:$0xff] }
  0xb3   :  { %2988 = vmatpush3.bf16.msra.mxu1 %v3348_v40  ;;  %2995 = vmatprep.subr.bf16.mxu0 %v3355_v48  ;;  %v350_v40 = vpack.c.bf16 %v302_v35, %v302_v35  ;;  %v2477_v35 = vld [vmem:[%s3711_s5 + $0x28] sm:$0xff] }
  0xb4   :  { %3017 = vmatprep.subr.bf16.mxu1 %v3356_v50  ;;  %v3150_v36 = vpack.c.bf16 %v2477_v35, %v2476_v34 }
  0xb5   :  { %2250 = vmatmul.mubr.bf16.vlgmr.msra.gmra.mrb[16].mxu0 %v346_v58  ;;  %v3120_v58 = vpack.c.bf16 %v2379_v55, %v2378_v54 }
  0xb6   :  { %2290 = vmatmul.mubr.bf16.vlgmr.msra.gmra.mrb[16].mxu1 %v348_v61  ;;  %2996 = vmatpush3.bf16.msra.mxu0 %v3357_v53  ;;  %v2382_v61 = vld [vmem:[%s3709_s3 + $0x20] sm:$0xff] }
  0xb7   :  { %3018 = vmatpush3.bf16.msra.mxu1 %v3358_v56  ;;  %2997 = vmatprep.subr.bf16.mxu0 %v3359_v59  ;;  %v2380_v56 = vld [vmem:[%s3709_s3 + $0x10] sm:$0xff]  ;;  %v2381_v59 = vld [vmem:[%s3709_s3 + $0x18] sm:$0xff] }
  0xb8   :  { %3019 = vmatprep.subr.bf16.mxu1 %v3360_v62  ;;  %2329 = vmatprep.mubr.bf16.mxu0 %v351_v38  ;;  %v3123_v60 = vpack.c.bf16 %v2381_v59, %v2380_v56  ;;  %v2383_v62 = vld [vmem:[%s3709_s3 + $0x28] sm:$0xff] }
  0xb9   :  { %2369 = vmatprep.mubr.bf16.mxu1 %v353_v39 }
  0xba   :  { %2998 = vmatpush3.bf16.msra.mxu0 %v3361_v63  ;;  %v3126_v63 = vpack.c.bf16 %v2383_v62, %v2382_v61 }
  0xbb   :  { %3020 = vmatpush3.bf16.msra.mxu1 %v3362_v0  ;;  %2999 = vmatprep.subr.bf16.mxu0 %v3363_v1  ;;  %v2384_v0 = vld [vmem:[%s3709_s3 + $0x30] sm:$0xff]  ;;  %v2385_v1 = vld [vmem:[%s3709_s3 + $0x38] sm:$0xff] }
  0xbc   :  { %3021 = vmatprep.subr.bf16.mxu1 %v3364_v2  ;;  %v3129_v2 = vpack.c.bf16 %v2385_v1, %v2384_v0 }
  0xbe   :  { %3000 = vmatpush3.bf16.msra.mxu0 %v3365_v3  ;;  %v2386_v3 = vld [vmem:[%s3709_s3 + $0x40] sm:$0xff] }
  0xbf   :  { %3022 = vmatpush3.bf16.msra.mxu1 %v3366_v4  ;;  %3001 = vmatprep.subr.bf16.mxu0 %v3367_v5  ;;  %v2387_v4 = vld [vmem:[%s3709_s3 + $0x48] sm:$0xff] }
  0xc0   :  { %3023 = vmatprep.subr.bf16.mxu1 %v3368_v6  ;;  %v3132_v5 = vpack.c.bf16 %v2387_v4, %v2386_v3  ;;  %v2388_v6 = vld [vmem:[%s3709_s3 + $0x50] sm:$0xff] }
  0xc2   :  { %3002 = vmatpush3.bf16.msra.mxu0 %v3369_v7  ;;  %v2389_v7 = vld [vmem:[%s3709_s3 + $0x58] sm:$0xff] }
  0xc3   :  { %3024 = vmatpush3.bf16.msra.mxu1 %v3370_v8  ;;  %3003 = vmatprep.subr.bf16.mxu0 %v3371_v9 }
  0xc4   :  { %3025 = vmatprep.subr.bf16.mxu1 %v3372_v10 }
  0xc6   :  { %3004 = vmatpush3.bf16.msra.mxu0 %v3373_v11  ;;  %v3135_v11 = vpack.c.bf16 %v2389_v7, %v2388_v6 }
  0xc7   :  { %3026 = vmatpush3.bf16.msra.mxu1 %v3374_v12  ;;  %3005 = vmatprep.subr.bf16.mxu0 %v3375_v13 }
  0xc8   :  { %3027 = vmatprep.subr.bf16.mxu1 %v3376_v14 }
  0xca   :  { %3006 = vmatpush3.bf16.msra.mxu0 %v3377_v15 }
  0xcb   :  { %3028 = vmatpush3.bf16.msra.mxu1 %v3378_v16  ;;  %3007 = vmatprep.subr.bf16.mxu0 %v3379_v17 }
  0xcc   :  { %3029 = vmatprep.subr.bf16.mxu1 %v3380_v18 }
  0xce   :  { %3008 = vmatpush3.bf16.msra.mxu0 %v3381_v19 }
  0xcf   :  { %3030 = vmatpush3.bf16.msra.mxu1 %v3382_v20  ;;  %3009 = vmatprep.subr.bf16.mxu0 %v3383_v21  ;;  %v2390_v21 = vld [vmem:[%s3709_s3 + $0x60] sm:$0xff] }
  0xd0   :  { %3031 = vmatprep.subr.bf16.mxu1 %v3384_v22  ;;  %v2391_v22 = vld [vmem:[%s3709_s3 + $0x68] sm:$0xff] }
  0xd2   :  { %3010 = vmatpush3.bf16.msra.mxu0 %v3385_v23  ;;  %v3138_v23 = vpack.c.bf16 %v2391_v22, %v2390_v21  ;;  %v2478_v22 = vld [vmem:[%s3711_s5 + $0x30] sm:$0xff] }
  0xd3   :  { %3032 = vmatpush3.bf16.msra.mxu1 %v3386_v24  ;;  %3119 = vmatprep.subr.bf16.mxu0 %v3445_v57  ;;  %v2392_v24 = vld [vmem:[%s3709_s3 + $0x70] sm:$0xff] }
  0xd4   :  { %3143 = vmatprep.subr.bf16.mxu1 %v3445_v57  ;;  %v3141_v26 = vpack.c.bf16 %v2393_v25, %v2392_v24  ;;  %v2772_v25 = vld [vmem:[%s3710_s4] ss:$0 sm:$0xff] }
  0xd5   :  { %2330 = vmatmul.mubr.bf16.vlgmr.msra.gmra.mrb[20].mxu0 %v350_v40 }
  0xd6   :  { %2370 = vmatmul.mubr.bf16.vlgmr.msra.gmra.mrb[20].mxu1 %v352_v41  ;;  %3121 = vmatpush3.bf16.msra.mxu0 %v3120_v58 }
  0xd7   :  { %3122 = vmatprep.subr.bf16.mxu0 %v3445_v57  ;;  %3097 = vmatprep.mubr.msk.f32.mxu0 %vm3446_vm0, %v3447_v27 }
  0xd8   :  { %3116 = vmatprep.mubr.msk.f32.mxu1 %vm3446_vm0, %v3447_v27  ;;  %3145 = vmatpush3.bf16.msra.mxu1 %v3144_v31 }
  0xd9   :  { %3146 = vmatprep.subr.bf16.mxu1 %v3445_v57 }
  0xda   :  { %3124 = vmatpush3.bf16.msra.mxu0 %v3123_v60 }
  0xdb   :  { %3125 = vmatprep.subr.bf16.mxu0 %v3445_v57 }
  0xdc   :  { %3148 = vmatpush3.bf16.msra.mxu1 %v3147_v33 }
  0xdd   :  { %3149 = vmatprep.subr.bf16.mxu1 %v3445_v57 }
  0xde   :  { %3127 = vmatpush3.bf16.msra.mxu0 %v3126_v63 }
  0xdf   :  { %3128 = vmatprep.subr.bf16.mxu0 %v3445_v57 }
  0xe0   :  { %3151 = vmatpush3.bf16.msra.mxu1 %v3150_v36 }
  0xe1   :  { %3152 = vmatprep.subr.bf16.mxu1 %v3445_v57 }
  0xe2   :  { %3130 = vmatpush3.bf16.msra.mxu0 %v3129_v2 }
  0xe3   :  { %3131 = vmatprep.subr.bf16.mxu0 %v3445_v57 }
  0xe6   :  { %3133 = vmatpush3.bf16.msra.mxu0 %v3132_v5 }
  0xe7   :  { %3134 = vmatprep.subr.bf16.mxu0 %v3445_v57 }
  0xea   :  { %3136 = vmatpush3.bf16.msra.mxu0 %v3135_v11 }
  0xeb   :  { %3137 = vmatprep.subr.bf16.mxu0 %v3445_v57 }
  0xee   :  { %3139 = vmatpush3.bf16.msra.mxu0 %v3138_v23  ;;  %v2479_v23 = vld [vmem:[%s3711_s5 + $0x38] sm:$0xff] }
  0xef   :  { %3140 = vmatprep.subr.bf16.mxu0 %v3445_v57  ;;  %v3153_v24 = vpack.c.bf16 %v2479_v23, %v2478_v22 }
  0xf1   :  { %3154 = vmatpush3.bf16.msra.mxu1 %v3153_v24 }
  0xf2   :  { %3142 = vmatpush3.bf16.msra.mxu0 %v3141_v26 }
 0x108   :  { %v2791_v42 = vpop.f32.mrb[0].mxu0 }
 0x109   :  { %v2813_v43 = vpop.f32.mrb[0].mxu1  ;;  %v2792_v44 = vpop.f32.mrb[1].mxu0 }
 0x10a   :  { %v2793_v45 = vadd.f32 %v2792_v44, %v2791_v42  ;;  %v2814_v46 = vpop.f32.mrb[1].mxu1  ;;  %v2794_v47 = vpop.f32.mrb[2].mxu0 }
 0x10b   :  { %v2815_v48 = vadd.f32 %v2814_v46, %v2813_v43  ;;  %v2816_v49 = vpop.f32.mrb[2].mxu1  ;;  %v2795_v50 = vpop.f32.mrb[3].mxu0 }
 0x10c   :  { %v1932_v51 = vadd.f32 %v2793_v45, %v2579_v37  ;;  %v2817_v52 = vpop.f32.mrb[3].mxu1 }
 0x10e   :  { %v1972_v53 = vadd.f32 %v2815_v48, %v1932_v51 }
 0x128   :  { %v2835_v8 = vpop.f32.mrb[4].mxu0 }
 0x129   :  { %v2857_v9 = vpop.f32.mrb[4].mxu1  ;;  %v2836_v10 = vpop.f32.mrb[5].mxu0 }
 0x12a   :  { %v2837_v12 = vadd.f32 %v2836_v10, %v2835_v8  ;;  %v2858_v13 = vpop.f32.mrb[5].mxu1  ;;  %v2838_v14 = vpop.f32.mrb[6].mxu0 }
 0x12b   :  { %v2859_v15 = vadd.f32 %v2858_v13, %v2857_v9  ;;  %v2860_v16 = vpop.f32.mrb[6].mxu1  ;;  %v2839_v17 = vpop.f32.mrb[7].mxu0 }
 0x12c   :  { %v2012_v18 = vadd.f32 %v2837_v12, %v1972_v53  ;;  %v2861_v19 = vpop.f32.mrb[7].mxu1 }
 0x12e   :  { %v2052_v20 = vadd.f32 %v2859_v15, %v2012_v18 }
 0x148   :  { %v2879_v38 = vpop.f32.mrb[8].mxu0 }
 0x149   :  { %v2901_v39 = vpop.f32.mrb[8].mxu1  ;;  %v2880_v40 = vpop.f32.mrb[9].mxu0 }
 0x14a   :  { %v2902_v41 = vpop.f32.mrb[9].mxu1  ;;  %v2881_v42 = vadd.f32 %v2880_v40, %v2879_v38  ;;  %v2882_v37 = vpop.f32.mrb[10].mxu0 }
 0x14b   :  { %v2903_v43 = vadd.f32 %v2902_v41, %v2901_v39  ;;  %v2904_v44 = vpop.f32.mrb[10].mxu1  ;;  %v2883_v45 = vpop.f32.mrb[11].mxu0 }
 0x14c   :  { %v2905_v46 = vpop.f32.mrb[11].mxu1  ;;  %v2092_v47 = vadd.f32 %v2881_v42, %v2052_v20 }
 0x14e   :  { %v2132_v48 = vadd.f32 %v2903_v43, %v2092_v47 }
 0x168   :  { %v2923_v49 = vpop.f32.mrb[12].mxu0 }
 0x169   :  { %v2945_v50 = vpop.f32.mrb[12].mxu1  ;;  %v2924_v51 = vpop.f32.mrb[13].mxu0 }
 0x16a   :  { %v2925_v52 = vadd.f32 %v2924_v51, %v2923_v49  ;;  %v2946_v53 = vpop.f32.mrb[13].mxu1  ;;  %v2926_v54 = vpop.f32.mrb[14].mxu0 }
 0x16b   :  { %v2947_v55 = vadd.f32 %v2946_v53, %v2945_v50  ;;  %v2948_v56 = vpop.f32.mrb[14].mxu1  ;;  %v2927_v57 = vpop.f32.mrb[15].mxu0 }
 0x16c   :  { %v2172_v58 = vadd.f32 %v2925_v52, %v2132_v48  ;;  %v2949_v59 = vpop.f32.mrb[15].mxu1 }
 0x16e   :  { %v2212_v60 = vadd.f32 %v2947_v55, %v2172_v58 }
 0x188   :  { %v2967_v61 = vpop.f32.mrb[16].mxu0 }
 0x189   :  { %v2989_v62 = vpop.f32.mrb[16].mxu1  ;;  %v2968_v63 = vpop.f32.mrb[17].mxu0 }
 0x18a   :  { %v2969_v0 = vadd.f32 %v2968_v63, %v2967_v61  ;;  %v2990_v1 = vpop.f32.mrb[17].mxu1  ;;  %v2970_v2 = vpop.f32.mrb[18].mxu0 }
 0x18b   :  { %v2991_v3 = vadd.f32 %v2990_v1, %v2989_v62  ;;  %v2992_v4 = vpop.f32.mrb[18].mxu1  ;;  %v2971_v5 = vpop.f32.mrb[19].mxu0 }
 0x18c   :  { %v2252_v6 = vadd.f32 %v2969_v0, %v2212_v60  ;;  %v2993_v7 = vpop.f32.mrb[19].mxu1 }
 0x18e   :  { %v2292_v8 = vadd.f32 %v2991_v3, %v2252_v6 }
 0x1a8   :  { %v3011_v9 = vpop.f32.mrb[20].mxu0 }
 0x1a9   :  { %v3033_v10 = vpop.f32.mrb[20].mxu1  ;;  %v3012_v11 = vpop.f32.mrb[21].mxu0 }
 0x1aa   :  { %v3034_v12 = vpop.f32.mrb[21].mxu1  ;;  %v3013_v13 = vadd.f32 %v3012_v11, %v3011_v9  ;;  %v3014_v15 = vpop.f32.mrb[22].mxu0 }
 0x1ab   :  { %v3035_v14 = vadd.f32 %v3034_v12, %v3033_v10  ;;  %v3036_v16 = vpop.f32.mrb[22].mxu1  ;;  %v3015_v17 = vpop.f32.mrb[23].mxu0 }
 0x1ac   :  { %v3037_v18 = vpop.f32.mrb[23].mxu1  ;;  %v2332_v19 = vadd.f32 %v3013_v13, %v2292_v8 }
 0x1ae   :  { %v2372_v20 = vadd.f32 %v3035_v14, %v2332_v19 }
 0x1b0   :  { %v2377_v21 = vmax.f32 %v2372_v20, 0.0 }
 0x1b2   :  { %3098 = vmatmul.mubr.f32.vlgmr.msra.gmra.mrb[24].mxu0 %v2377_v21 }
 0x285   :  { %v2467_v26 = vpop.f32.mrb[24].mxu0 }
 0x286   :  { %v2468_v27 = vadd.f32 %v2772_v25, %v2467_v26  ;;  %v3099_v28 = vpop.f32.mrb[25].mxu0 }
 0x288   :  { %v2471_v29 = vmax.f32 %v2468_v27, 0.0 }
 0x28a   :  { %3117 = vmatmul.mubr.msk.f32.vlgmr.msra.gmra.mrb[24].mxu1 %vm2487_vm1, %v2471_v29 }
 0x35d   :  { %v2557_v31 = vpop.f32.mrb[24].mxu1 }
 0x35e   :  { %v2558_v32 = vadd.f32 %v2773_v30, %v2557_v31  ;;  %v3118_v33 = vpop.f32.mrb[25].mxu1 }
 0x360   :  { %2561 = vst [vmem:[#allocation5] sm:$0xff] %v2558_v32 }
 0x361   :  { %2566 = vsyncadd [#allocation4], 96  ;;  %s3448_s5 = smov [#allocation5]  }
 0x362   :  { %s2567_s1 = sshll.u32 %s3448_s5, 4  ;;  %s2568_s1 = int_to_ptr.vmem [resolvable:$true] %s2567_s1 }
 0x363   :  { %s3415_s15 = scalar_lea.vmem %s2568_s1, 32  ;;  %s3419_s4 = scalar_lea.vmem %s2568_s1, 128 }
 0x364   :  { %p3416_p8 = scmp.ne.s32.totalorder %s2568_s1, %s3415_s15  ;;  %p3420_p9 = scmp.lt.s32.totalorder %s2568_s1, %s2568_s1 }
 0x365   :  { %p3421_p10 = scmp.lt.s32.totalorder %s3419_s4, %s3415_s15 }
 0x367   :  { %p3422_p11 = por %p3421_p10, %p3420_p9 }
 0x369   :  { %p3423_p12 = pnand %p3422_p11, %p3416_p8 }
 0x36b   :  { %3426 = shalt.err (!%p3423_p12)
}
 0x36c   :  { %s3427_s6 = scalar_lea.hbm %s3713_s7, 32 }
 0x36d   :  { %p3428_p13 = scmp.ne.s32.totalorder %s3713_s7, %s3427_s6  ;;  %p3431_p0 = scmp.lt.u32.totalorder %s3427_s6, %s3713_s7 }
 0x36f   :  { %p3433_p1 = pnand %p3431_p0, %p3428_p13 }
 0x371   :  { %3436 = shalt.err (!%p3433_p1)
}
 0x372   :  { %s3449_s21 = smov 32   ;;  %s3450_s22 = smov 2  }
 0x373   :  { %2573 = dma.vmem_to_hbm [thread:$0]  %s2568_s1, 32, %s3713_s7, [#allocation4], %s3449_s21, %s3449_s21, %s3450_s22  }
 0x374   :  { %3439 = dma.done.wait [#allocation4], 128  }
 0x375   :  { %3440 = vsyncadd [#allocation4], 4294967168 }
 0x376   :  { %2577 = vsyncpa [#allocation3], 1 }
 0x377   :  { %2578 = vsyncpa [#allocation4], 1 }

</bundles_post_ra>
